<compile_context>
chip_gen: v7x
topology: tpu7x:2x2x1
jax: 0.10.0
libtpu: 0.0.40
codegen_flags: <defaults>
</compile_context>

<pallas_src>
import jax
import jax.numpy as jnp
from jax.experimental import pallas as pl
from jax.experimental.pallas import tpu as pltpu


def qnet_kernel(x_ref, w1_ref, wsq_ref, w3_ref, w4_ref, bn_ref, b3_ref, out_ref):
    # x_ref  : (tm, S)        f32   activation tile (true state width)
    # w1_ref : (S, 128)       bf16  fc1 (out padded 64 -> 128)
    # wsq_ref: (3, 128, 128)  bf16  fc2, fc5, fc6 (padded where needed)
    # w3_ref : (128, 256)     bf16  fc3
    # w4_ref : (256, 128)     bf16  fc4
    # bn_ref : (5, 128)       f32   biases b1, b2, b4, b5, b6 (zero-padded)
    # b3_ref : (1, 256)       f32   bias b3
    # out_ref: (tm, 128)      f32   final layer (action_size padded to 128)
    bf16, f32 = jnp.bfloat16, jnp.float32

    h = x_ref[...].astype(bf16)                                   # (tm, S)
    # fc1: S -> 128
    h = jnp.dot(h, w1_ref[...], preferred_element_type=f32) + bn_ref[0]
    h = jnp.maximum(h, 0.0)
    # fc2: 128 -> 128
    h = jnp.dot(h.astype(bf16), wsq_ref[0], preferred_element_type=f32) + bn_ref[1]
    h = jnp.maximum(h, 0.0)
    # fc3: 128 -> 256
    h = jnp.dot(h.astype(bf16), w3_ref[...], preferred_element_type=f32) + b3_ref[0]
    h = jnp.maximum(h, 0.0)
    # fc4: 256 -> 128
    h = jnp.dot(h.astype(bf16), w4_ref[...], preferred_element_type=f32) + bn_ref[2]
    h = jnp.maximum(h, 0.0)
    # fc5: 128 -> 128
    h = jnp.dot(h.astype(bf16), wsq_ref[1], preferred_element_type=f32) + bn_ref[3]
    h = jnp.maximum(h, 0.0)
    # fc6: 128 -> 128 (no ReLU)
    h = jnp.dot(h.astype(bf16), wsq_ref[2], preferred_element_type=f32) + bn_ref[4]

    out_ref[...] = h.astype(out_ref.dtype)


def _round_up(n, m):
    return -(-n // m) * m


def _multi_tensorcore():
    """Best-effort detection of multi-TensorCore chips (v7x). Safe fallback."""
    try:
        kind = jax.devices()[0].device_kind.lower()
        return ("v7" in kind) or ("7x" in kind)
    except Exception:
        return False


def _pick_tiling(B, multicore):
    if B <= 128:
        if multicore and B >= 16:
            # Split mid-size batches across the 2 TensorCores (v7x).
            tm = _round_up(pl.cdiv(B, 2), 8)
            return tm, 2 * tm
        tm = max(8, _round_up(B, 8))
        return tm, tm
    # Large batch: bigger tiles amortize grid-step overhead & MXU weight pushes.
    tm = 256 if B >= 256 else 128
    return tm, _round_up(B, tm)


def qnetwork_deeper_forward(x, packed, action_size):
    """x: (B, state_size) f32/any-float. Returns (B, action_size) f32."""
    assert action_size <= 128, "final layer is packed to a single 128-lane tile"
    B, S = x.shape
    tm, B_pad = _pick_tiling(B, _multi_tensorcore())

    x_in = x.astype(jnp.float32)
    if B_pad != B:
        # Only the batch dim is padded (rows of S f32 each) -- tiny.
        x_in = jnp.pad(x_in, ((0, B_pad - B), (0, 0)))

    const2 = lambda i: (0, 0)
    const3 = lambda i: (0, 0, 0)

    out = pl.pallas_call(
        qnet_kernel,
        out_shape=jax.ShapeDtypeStruct((B_pad, 128), jnp.float32),
        grid=(B_pad // tm,),
        in_specs=[
            pl.BlockSpec((tm, S), lambda i: (i, 0)),        # activations
            pl.BlockSpec((S, 128), const2),                 # fc1 (resident)
            pl.BlockSpec((3, 128, 128), const3),            # fc2/fc5/fc6
            pl.BlockSpec((128, 256), const2),               # fc3
            pl.BlockSpec((256, 128), const2),               # fc4
            pl.BlockSpec((5, 128), const2),                 # biases 1,2,4,5,6
            pl.BlockSpec((1, 256), const2),                 # bias 3
        ],
        out_specs=pl.BlockSpec((tm, 128), lambda i: (i, 0)),
        compiler_params=pltpu.CompilerParams(
            dimension_semantics=("parallel",)),
    )(x_in, packed["w1"], packed["wsq"], packed["w3"], packed["w4"],
      packed["bn"], packed["b3"])

    return out[:B, :action_size]


def init_params(key, state_size, action_size):
    """Deterministic init (uniform fan-in scaling, like PyTorch default).

    Weight layout is (in_features, out_features), i.e. transposed vs PyTorch,
    so y = x @ W + b == F.linear(x, W_pt, b) with W = W_pt.T.
    """
    dims = [state_size, 64, 128, 256, 128, 64, action_size]
    params = []
    for i in range(len(dims) - 1):
        fan_in, fan_out = dims[i], dims[i + 1]
        key, kw, kb = jax.random.split(key, 3)
        bound = 1.0 / jnp.sqrt(fan_in)
        w = jax.random.uniform(kw, (fan_in, fan_out), jnp.float32, -bound, bound)
        b = jax.random.uniform(kb, (fan_out,), jnp.float32, -bound, bound)
        params.append((w, b))
    return params


def pack_params(params):
    """Pack per-layer (w:(in,out), b:(out,)) into tile-aligned buffers."""
    (w1, b1), (w2, b2), (w3, b3), (w4, b4), (w5, b5), (w6, b6) = params
    S = w1.shape[0]

    def pad_w(w, k, n):
        buf = jnp.zeros((k, n), jnp.bfloat16)
        return buf.at[:w.shape[0], :w.shape[1]].set(w.astype(jnp.bfloat16))

    def pad_b(b, n):
        buf = jnp.zeros((n,), jnp.float32)
        return buf.at[:b.shape[0]].set(b.astype(jnp.float32))

    return dict(
        w1=pad_w(w1, S, 128),
        wsq=jnp.stack([pad_w(w2, 128, 128),
                       pad_w(w5, 128, 128),
                       pad_w(w6, 128, 128)]),
        w3=pad_w(w3, 128, 256),
        w4=pad_w(w4, 256, 128),
        bn=jnp.stack([pad_b(b1, 128), pad_b(b2, 128), pad_b(b4, 128),
                      pad_b(b5, 128), pad_b(b6, 128)]),
        b3=pad_b(b3, 256).reshape(1, 256),
    )


def reference_forward(x, params):
    """Pure-JAX reference with the same bf16 weight/activation quantization."""
    h = x.astype(jnp.float32)
    for i, (w, b) in enumerate(params):
        y = jnp.dot(h.astype(jnp.bfloat16), w.astype(jnp.bfloat16),
                    preferred_element_type=jnp.float32) + b[None, :]
        h = jnp.maximum(y, 0.0) if i < len(params) - 1 else y
    return h


if __name__ == "__main__":
    state_size = 8
    action_size = 4
    batch = 2

    key = jax.random.PRNGKey(0)
    key, kx = jax.random.split(key)
    x = jax.random.normal(kx, (batch, state_size), jnp.float32)
    params = init_params(key, state_size, action_size)
    packed = pack_params(params)

    q = qnetwork_deeper_forward(x, packed, action_size)
    q = jax.block_until_ready(q)

    q_ref = reference_forward(x, params)
    assert q.shape == (batch, action_size)
    assert jnp.allclose(q, q_ref, atol=1e-2, rtol=1e-2), "mismatch vs JAX reference"

    print("KERNEL_OK")
</pallas_src>

<mosaic_0001>
module attributes {stable_mosaic.version = 11 : i64} {
  func.func @qnet_kernel(%arg0: i32, %arg1: memref<8x8xf32, #tpu.memory_space<vmem>>, %arg2: memref<8x128xbf16, #tpu.memory_space<vmem>>, %arg3: memref<3x128x128xbf16, #tpu.memory_space<vmem>>, %arg4: memref<128x256xbf16, #tpu.memory_space<vmem>>, %arg5: memref<256x128xbf16, #tpu.memory_space<vmem>>, %arg6: memref<5x128xf32, #tpu.memory_space<vmem>>, %arg7: memref<1x256xf32, #tpu.memory_space<vmem>>, %arg8: memref<8x128xf32, #tpu.memory_space<vmem>>) attributes {dimension_semantics = [#tpu.dimension_semantics<parallel>], iteration_bounds = array<i64: 1>, scalar_prefetch = 0 : i64, scratch_operands = 0 : i64, tpu.core_type = #tpu.core_type<tc>, window_params = [{transform_indices = @transform_0, window_bounds = array<i64: 8, 8>}, {pipeline_mode = #tpu.pipeline_mode<synchronous>, transform_indices = @transform_1, window_bounds = array<i64: 8, 128>}, {pipeline_mode = #tpu.pipeline_mode<synchronous>, transform_indices = @transform_2, window_bounds = array<i64: 3, 128, 128>}, {pipeline_mode = #tpu.pipeline_mode<synchronous>, transform_indices = @transform_3, window_bounds = array<i64: 128, 256>}, {pipeline_mode = #tpu.pipeline_mode<synchronous>, transform_indices = @transform_4, window_bounds = array<i64: 256, 128>}, {pipeline_mode = #tpu.pipeline_mode<synchronous>, transform_indices = @transform_5, window_bounds = array<i64: 5, 128>}, {pipeline_mode = #tpu.pipeline_mode<synchronous>, transform_indices = @transform_6, window_bounds = array<i64: 1, 256>}, {transform_indices = @transform_7, window_bounds = array<i64: 8, 128>}]} {
    %c0 = arith.constant 0 : index
    %c0_0 = arith.constant 0 : index
    %0 = vector.load %arg1[%c0, %c0_0] : memref<8x8xf32, #tpu.memory_space<vmem>>, vector<8x8xf32>
    %1 = arith.truncf %0 : vector<8x8xf32> to vector<8x8xbf16>
    %c0_1 = arith.constant 0 : index
    %c0_2 = arith.constant 0 : index
    %2 = vector.load %arg2[%c0_1, %c0_2] : memref<8x128xbf16, #tpu.memory_space<vmem>>, vector<8x128xbf16>
    %cst = arith.constant dense<0.000000e+00> : vector<8x128xf32>
    %3 = tpu.matmul %1, %2, %cst {dimension_numbers = #tpu.dot_dimension_numbers<[1], [0], [0], [1], [0, 0, 1, 1], [], []>} : vector<8x8xbf16>, vector<8x128xbf16>, vector<8x128xf32> -> vector<8x128xf32>
    %c0_3 = arith.constant 0 : index
    %c0_4 = arith.constant 0 : index
    %4 = vector.load %arg6[%c0_3, %c0_4] : memref<5x128xf32, #tpu.memory_space<vmem>>, vector<1x128xf32>
    %5 = vector.shape_cast %4 : vector<1x128xf32> to vector<128xf32>
    %6 = vector.shape_cast %5 : vector<128xf32> to vector<1x128xf32>
    %7 = vector.broadcast %6 : vector<1x128xf32> to vector<8x128xf32>
    %8 = arith.addf %3, %7 : vector<8x128xf32>
    %cst_5 = arith.constant 0.000000e+00 : f32
    %9 = vector.broadcast %cst_5 : f32 to vector<8x128xf32>
    %10 = arith.maximumf %8, %9 : vector<8x128xf32>
    %11 = arith.truncf %10 : vector<8x128xf32> to vector<8x128xbf16>
    %c0_6 = arith.constant 0 : index
    %c0_7 = arith.constant 0 : index
    %c0_8 = arith.constant 0 : index
    %12 = vector.load %arg3[%c0_6, %c0_7, %c0_8] : memref<3x128x128xbf16, #tpu.memory_space<vmem>>, vector<1x128x128xbf16>
    %13 = vector.shape_cast %12 : vector<1x128x128xbf16> to vector<128x128xbf16>
    %cst_9 = arith.constant dense<0.000000e+00> : vector<8x128xf32>
    %14 = tpu.matmul %11, %13, %cst_9 {dimension_numbers = #tpu.dot_dimension_numbers<[1], [0], [0], [1], [0, 0, 1, 1], [], []>} : vector<8x128xbf16>, vector<128x128xbf16>, vector<8x128xf32> -> vector<8x128xf32>
    %c1 = arith.constant 1 : index
    %c0_10 = arith.constant 0 : index
    %15 = vector.load %arg6[%c1, %c0_10] : memref<5x128xf32, #tpu.memory_space<vmem>>, vector<1x128xf32>
    %16 = vector.shape_cast %15 : vector<1x128xf32> to vector<128xf32>
    %17 = vector.shape_cast %16 : vector<128xf32> to vector<1x128xf32>
    %18 = vector.broadcast %17 : vector<1x128xf32> to vector<8x128xf32>
    %19 = arith.addf %14, %18 : vector<8x128xf32>
    %cst_11 = arith.constant 0.000000e+00 : f32
    %20 = vector.broadcast %cst_11 : f32 to vector<8x128xf32>
    %21 = arith.maximumf %19, %20 : vector<8x128xf32>
    %22 = arith.truncf %21 : vector<8x128xf32> to vector<8x128xbf16>
    %c0_12 = arith.constant 0 : index
    %c0_13 = arith.constant 0 : index
    %23 = vector.load %arg4[%c0_12, %c0_13] : memref<128x256xbf16, #tpu.memory_space<vmem>>, vector<128x256xbf16>
    %cst_14 = arith.constant dense<0.000000e+00> : vector<8x256xf32>
    %24 = tpu.matmul %22, %23, %cst_14 {dimension_numbers = #tpu.dot_dimension_numbers<[1], [0], [0], [1], [0, 0, 1, 1], [], []>} : vector<8x128xbf16>, vector<128x256xbf16>, vector<8x256xf32> -> vector<8x256xf32>
    %c0_15 = arith.constant 0 : index
    %c0_16 = arith.constant 0 : index
    %25 = vector.load %arg7[%c0_15, %c0_16] : memref<1x256xf32, #tpu.memory_space<vmem>>, vector<1x256xf32>
    %26 = vector.shape_cast %25 : vector<1x256xf32> to vector<256xf32>
    %27 = vector.shape_cast %26 : vector<256xf32> to vector<1x256xf32>
    %28 = vector.broadcast %27 : vector<1x256xf32> to vector<8x256xf32>
    %29 = arith.addf %24, %28 : vector<8x256xf32>
    %cst_17 = arith.constant 0.000000e+00 : f32
    %30 = vector.broadcast %cst_17 : f32 to vector<8x256xf32>
    %31 = arith.maximumf %29, %30 : vector<8x256xf32>
    %32 = arith.truncf %31 : vector<8x256xf32> to vector<8x256xbf16>
    %c0_18 = arith.constant 0 : index
    %c0_19 = arith.constant 0 : index
    %33 = vector.load %arg5[%c0_18, %c0_19] : memref<256x128xbf16, #tpu.memory_space<vmem>>, vector<256x128xbf16>
    %cst_20 = arith.constant dense<0.000000e+00> : vector<8x128xf32>
    %34 = tpu.matmul %32, %33, %cst_20 {dimension_numbers = #tpu.dot_dimension_numbers<[1], [0], [0], [1], [0, 0, 1, 1], [], []>} : vector<8x256xbf16>, vector<256x128xbf16>, vector<8x128xf32> -> vector<8x128xf32>
    %c2 = arith.constant 2 : index
    %c0_21 = arith.constant 0 : index
    %35 = vector.load %arg6[%c2, %c0_21] : memref<5x128xf32, #tpu.memory_space<vmem>>, vector<1x128xf32>
    %36 = vector.shape_cast %35 : vector<1x128xf32> to vector<128xf32>
    %37 = vector.shape_cast %36 : vector<128xf32> to vector<1x128xf32>
    %38 = vector.broadcast %37 : vector<1x128xf32> to vector<8x128xf32>
    %39 = arith.addf %34, %38 : vector<8x128xf32>
    %cst_22 = arith.constant 0.000000e+00 : f32
    %40 = vector.broadcast %cst_22 : f32 to vector<8x128xf32>
    %41 = arith.maximumf %39, %40 : vector<8x128xf32>
    %42 = arith.truncf %41 : vector<8x128xf32> to vector<8x128xbf16>
    %c1_23 = arith.constant 1 : index
    %c0_24 = arith.constant 0 : index
    %c0_25 = arith.constant 0 : index
    %43 = vector.load %arg3[%c1_23, %c0_24, %c0_25] : memref<3x128x128xbf16, #tpu.memory_space<vmem>>, vector<1x128x128xbf16>
    %44 = vector.shape_cast %43 : vector<1x128x128xbf16> to vector<128x128xbf16>
    %cst_26 = arith.constant dense<0.000000e+00> : vector<8x128xf32>
    %45 = tpu.matmul %42, %44, %cst_26 {dimension_numbers = #tpu.dot_dimension_numbers<[1], [0], [0], [1], [0, 0, 1, 1], [], []>} : vector<8x128xbf16>, vector<128x128xbf16>, vector<8x128xf32> -> vector<8x128xf32>
    %c3 = arith.constant 3 : index
    %c0_27 = arith.constant 0 : index
    %46 = vector.load %arg6[%c3, %c0_27] : memref<5x128xf32, #tpu.memory_space<vmem>>, vector<1x128xf32>
    %47 = vector.shape_cast %46 : vector<1x128xf32> to vector<128xf32>
    %48 = vector.shape_cast %47 : vector<128xf32> to vector<1x128xf32>
    %49 = vector.broadcast %48 : vector<1x128xf32> to vector<8x128xf32>
    %50 = arith.addf %45, %49 : vector<8x128xf32>
    %cst_28 = arith.constant 0.000000e+00 : f32
    %51 = vector.broadcast %cst_28 : f32 to vector<8x128xf32>
    %52 = arith.maximumf %50, %51 : vector<8x128xf32>
    %53 = arith.truncf %52 : vector<8x128xf32> to vector<8x128xbf16>
    %c2_29 = arith.constant 2 : index
    %c0_30 = arith.constant 0 : index
    %c0_31 = arith.constant 0 : index
    %54 = vector.load %arg3[%c2_29, %c0_30, %c0_31] : memref<3x128x128xbf16, #tpu.memory_space<vmem>>, vector<1x128x128xbf16>
    %55 = vector.shape_cast %54 : vector<1x128x128xbf16> to vector<128x128xbf16>
    %cst_32 = arith.constant dense<0.000000e+00> : vector<8x128xf32>
    %56 = tpu.matmul %53, %55, %cst_32 {dimension_numbers = #tpu.dot_dimension_numbers<[1], [0], [0], [1], [0, 0, 1, 1], [], []>} : vector<8x128xbf16>, vector<128x128xbf16>, vector<8x128xf32> -> vector<8x128xf32>
    %c4 = arith.constant 4 : index
    %c0_33 = arith.constant 0 : index
    %57 = vector.load %arg6[%c4, %c0_33] : memref<5x128xf32, #tpu.memory_space<vmem>>, vector<1x128xf32>
    %58 = vector.shape_cast %57 : vector<1x128xf32> to vector<128xf32>
    %59 = vector.shape_cast %58 : vector<128xf32> to vector<1x128xf32>
    %60 = vector.broadcast %59 : vector<1x128xf32> to vector<8x128xf32>
    %61 = arith.addf %56, %60 : vector<8x128xf32>
    %c0_34 = arith.constant 0 : index
    %c0_35 = arith.constant 0 : index
    %62 = vector.load %arg8[%c0_34, %c0_35] : memref<8x128xf32, #tpu.memory_space<vmem>>, vector<8x128xf32>
    tpu.vector_store %arg8[%c0_34, %c0_35], %61 {strides = array<i32>} : memref<8x128xf32, #tpu.memory_space<vmem>>, vector<8x128xf32>,
    return
  }
  func.func @transform_0(%arg0: i32) -> (i32, i32) {
    %c0_i32 = arith.constant 0 : i32
    %c0_i32_0 = arith.constant 0 : i32
    return %arg0, %c0_i32 : i32, i32
  }
  func.func @transform_1(%arg0: i32) -> (i32, i32) {
    %c0_i32 = arith.constant 0 : i32
    %c0_i32_0 = arith.constant 0 : i32
    %c0_i32_1 = arith.constant 0 : i32
    return %c0_i32, %c0_i32_0 : i32, i32
  }
  func.func @transform_2(%arg0: i32) -> (i32, i32, i32) {
    %c0_i32 = arith.constant 0 : i32
    %c0_i32_0 = arith.constant 0 : i32
    %c0_i32_1 = arith.constant 0 : i32
    %c0_i32_2 = arith.constant 0 : i32
    return %c0_i32, %c0_i32_0, %c0_i32_1 : i32, i32, i32
  }
  func.func @transform_3(%arg0: i32) -> (i32, i32) {
    %c0_i32 = arith.constant 0 : i32
    %c0_i32_0 = arith.constant 0 : i32
    %c0_i32_1 = arith.constant 0 : i32
    return %c0_i32, %c0_i32_0 : i32, i32
  }
  func.func @transform_4(%arg0: i32) -> (i32, i32) {
    %c0_i32 = arith.constant 0 : i32
    %c0_i32_0 = arith.constant 0 : i32
    %c0_i32_1 = arith.constant 0 : i32
    return %c0_i32, %c0_i32_0 : i32, i32
  }
  func.func @transform_5(%arg0: i32) -> (i32, i32) {
    %c0_i32 = arith.constant 0 : i32
    %c0_i32_0 = arith.constant 0 : i32
    %c0_i32_1 = arith.constant 0 : i32
    return %c0_i32, %c0_i32_0 : i32, i32
  }
  func.func @transform_6(%arg0: i32) -> (i32, i32) {
    %c0_i32 = arith.constant 0 : i32
    %c0_i32_0 = arith.constant 0 : i32
    %c0_i32_1 = arith.constant 0 : i32
    return %c0_i32, %c0_i32_0 : i32, i32
  }
  func.func @transform_7(%arg0: i32) -> (i32, i32) {
    %c0_i32 = arith.constant 0 : i32
    %c0_i32_0 = arith.constant 0 : i32
    return %arg0, %c0_i32 : i32, i32
  }
}

</mosaic_0001>

<bundles_post_ra>
// kernel: tpu_custom_call.1
= control target key start
LH: loop header
LB: loop body
LE: loop exit
PB: predicated region body
PF: predicated region fallthrough
CT: control target
= control target key end

     0   :  { %12 = vsyncpa [#allocation3], 0  ;;  %s1415_s0 = inlined_call_operand.hbm [shape: f32[8,8], index: 0, kind: input, shape index: {}]   ;;  %s1416_s1 = inlined_call_operand.hbm [shape: bf16[8,128], index: 1, kind: input, shape index: {}]   ;;  %s1417_s2 = inlined_call_operand.hbm [shape: bf16[3,128,128], index: 2, kind: input, shape index: {}]   ;;  %s1418_s3 = inlined_call_operand.hbm [shape: bf16[128,256], index: 3, kind: input, shape index: {}]   ;;  %s1419_s4 = inlined_call_operand.hbm [shape: bf16[256,128], index: 4, kind: input, shape index: {}]   ;;  %s1420_s5 = inlined_call_operand.vmem [shape: f32[5,128], index: 5, kind: input, shape index: {}]   ;;  %s1421_s6 = inlined_call_operand.vmem [shape: f32[1,256], index: 6, kind: input, shape index: {}]   ;;  %s1422_s7 = inlined_call_operand.hbm [shape: f32[8,128], index: 7, kind: output, shape index: {}]  }
   0x1   :  { %13 = vsyncpa [#allocation6], 0 }
   0x2   :  { %14 = vsyncpa [#allocation9], 0 }
   0x3   :  { %15 = vsyncpa [#allocation4], 0  ;;  %s1225_s24 = smov [#allocation5]   ;;  %s1226_s26 = smov [#allocation8]  }
   0x4   :  { %s32_s25 = sshll.u32 %s1225_s24, 4  ;;  %s53_s27 = sshll.u32 %s1226_s26, 4  ;;  %s33_s25 = int_to_ptr.vmem [resolvable:$true] %s32_s25  ;;  %s1278_s27 = int_to_ptr.vmem [resolvable:$true] %s53_s27 }
   0x5   :  { %s1085_s30 = scalar_lea.hbm %s1416_s1, 64 }
   0x6   :  { %p1086_p0 = scmp.ne.s32.totalorder %s1416_s1, %s1085_s30  ;;  %p1089_p1 = scmp.lt.u32.totalorder %s1085_s30, %s1416_s1 }
   0x8   :  { %p1091_p2 = pnand %p1089_p1, %p1086_p0 }
   0xa   :  { %1094 = shalt.err (!%p1091_p2)
}
   0xb   :  { %s1095_s12 = scalar_lea.vmem %s33_s25, 64  ;;  %p1100_p4 = scmp.lt.s32.totalorder %s33_s25, %s33_s25 }
   0xc   :  { %p1096_p3 = scmp.ne.s32.totalorder %s33_s25, %s1095_s12  ;;  %p1101_p5 = scmp.lt.s32.totalorder %s1095_s12, %s1095_s12 }
   0xe   :  { %p1102_p6 = por %p1101_p5, %p1100_p4 }
  0x10   :  { %p1103_p7 = pnand %p1102_p6, %p1096_p3 }
  0x12   :  { %1106 = shalt.err (!%p1103_p7)
}
  0x13   :  { %35 = dma.hbm_to_vmem [thread:$0]  %s1416_s1, 64, %s33_s25, [#allocation6]  }
  0x14   :  { %s1107_s17 = scalar_lea.hbm %s1418_s3, 2048 }
  0x15   :  { %p1108_p8 = scmp.ne.s32.totalorder %s1418_s3, %s1107_s17  ;;  %p1111_p9 = scmp.lt.u32.totalorder %s1107_s17, %s1418_s3 }
  0x17   :  { %p1113_p10 = pnand %p1111_p9, %p1108_p8 }
  0x19   :  { %1116 = shalt.err (!%p1113_p10)
}
  0x1a   :  { %s1117_s22 = scalar_lea.vmem %s1278_s27, 2048  ;;  %p1122_p12 = scmp.lt.s32.totalorder %s1278_s27, %s1278_s27 }
  0x1b   :  { %p1118_p11 = scmp.ne.s32.totalorder %s1278_s27, %s1117_s22  ;;  %p1123_p13 = scmp.lt.s32.totalorder %s1117_s22, %s1117_s22 }
  0x1d   :  { %p1124_p0 = por %p1123_p13, %p1122_p12 }
  0x1f   :  { %p1125_p1 = pnand %p1124_p0, %p1118_p11 }
  0x21   :  { %1128 = shalt.err (!%p1125_p1)
}
  0x22   :  { %s1227_s1 = smov 128   ;;  %s1228_s23 = smov 8  }
  0x23   :  { %59 = dma.hbm_to_vmem [thread:$0]  %s1418_s3, 2048, %s1278_s27, [#allocation9], %s1227_s1, %s1227_s1, %s1228_s23  }
  0x24   :  { %s1229_s26 = smov [#allocation2]   ;;  %s1230_s29 = smov [#allocation7]  }
  0x25   :  { %s22_s28 = sshll.u32 %s1229_s26, 4  ;;  %s41_s30 = sshll.u32 %s1230_s29, 4  ;;  %s23_s28 = int_to_ptr.vmem [resolvable:$true] %s22_s28  ;;  %s1309_s30 = int_to_ptr.vmem [resolvable:$true] %s41_s30 }
  0x26   :  { %s1129_s10 = scalar_lea.hbm %s1415_s0, 128 }
  0x27   :  { %p1130_p2 = scmp.ne.s32.totalorder %s1415_s0, %s1129_s10  ;;  %p1133_p3 = scmp.lt.u32.totalorder %s1129_s10, %s1415_s0 }
  0x29   :  { %p1135_p4 = pnand %p1133_p3, %p1130_p2 }
  0x2b   :  { %1138 = shalt.err (!%p1135_p4)
}
  0x2c   :  { %s1139_s3 = scalar_lea.vmem %s23_s28, 128  ;;  %p1144_p6 = scmp.lt.s32.totalorder %s23_s28, %s23_s28 }
  0x2d   :  { %p1140_p5 = scmp.ne.s32.totalorder %s23_s28, %s1139_s3  ;;  %p1145_p7 = scmp.lt.s32.totalorder %s1139_s3, %s1139_s3 }
  0x2f   :  { %p1146_p8 = por %p1145_p7, %p1144_p6 }
  0x31   :  { %p1147_p9 = pnand %p1146_p8, %p1140_p5 }
  0x33   :  { %1150 = shalt.err (!%p1147_p9)
}
  0x34   :  { %25 = dma.hbm_to_vmem [thread:$0]  %s1415_s0, 128, %s23_s28, [#allocation3]  }
  0x35   :  { %s1151_s18 = scalar_lea.hbm %s1417_s2, 3072 }
  0x36   :  { %p1152_p10 = scmp.ne.s32.totalorder %s1417_s2, %s1151_s18  ;;  %p1155_p11 = scmp.lt.u32.totalorder %s1151_s18, %s1417_s2 }
  0x38   :  { %p1157_p12 = pnand %p1155_p11, %p1152_p10 }
  0x3a   :  { %1160 = shalt.err (!%p1157_p12)
}
  0x3b   :  { %s1161_s1 = scalar_lea.vmem %s1309_s30, 3072  ;;  %p1166_p0 = scmp.lt.s32.totalorder %s1309_s30, %s1309_s30 }
  0x3c   :  { %p1162_p13 = scmp.ne.s32.totalorder %s1309_s30, %s1161_s1  ;;  %p1167_p1 = scmp.lt.s32.totalorder %s1161_s1, %s1161_s1 }
  0x3e   :  { %p1168_p2 = por %p1167_p1, %p1166_p0 }
  0x40   :  { %p1169_p3 = pnand %p1168_p2, %p1162_p13 }
  0x42   :  { %1172 = shalt.err (!%p1169_p3)
}
  0x43   :  { %s1231_s0 = smov 64   ;;  %s1232_s23 = smov 4  }
  0x44   :  { %47 = dma.hbm_to_vmem [thread:$0]  %s1417_s2, 3072, %s1309_s30, [#allocation6], %s1231_s0, %s1231_s0, %s1232_s23  }
  0x45   :  { %s1233_s26 = smov [#allocation10]   ;;  %s1173_s9 = scalar_lea.hbm %s1419_s4, 2048 }
  0x46   :  { %s65_s28 = sshll.u32 %s1233_s26, 4  ;;  %p1174_p4 = scmp.ne.s32.totalorder %s1419_s4, %s1173_s9  ;;  %s66_s28 = int_to_ptr.vmem [resolvable:$true] %s65_s28 }
  0x47   :  { %p1177_p5 = scmp.lt.u32.totalorder %s1173_s9, %s1419_s4 }
  0x49   :  { %p1179_p6 = pnand %p1177_p5, %p1174_p4 }
  0x4b   :  { %1182 = shalt.err (!%p1179_p6)
}
  0x4c   :  { %s1183_s14 = scalar_lea.vmem %s66_s28, 2048  ;;  %p1188_p8 = scmp.lt.s32.totalorder %s66_s28, %s66_s28 }
  0x4d   :  { %p1184_p7 = scmp.ne.s32.totalorder %s66_s28, %s1183_s14  ;;  %p1189_p9 = scmp.lt.s32.totalorder %s1183_s14, %s1183_s14 }
  0x4f   :  { %p1190_p10 = por %p1189_p9, %p1188_p8 }
  0x51   :  { %p1191_p11 = pnand %p1190_p10, %p1184_p7 }
  0x53   :  { %1194 = shalt.err (!%p1191_p11)
}
  0x54   :  { %71 = dma.hbm_to_vmem [thread:$0]  %s1419_s4, 2048, %s66_s28, [#allocation9], %s1231_s0, %s1231_s0, %s1232_s23  }
  0x55   :  { %1217 = dma.done.wait [#allocation3], 128  }
  0x56   :  { %1218 = vsyncadd [#allocation3], 4294967168 }
  0x57   :  { %1219 = dma.done.wait [#allocation6], 3136  }
  0x58   :  { %1220 = vsyncadd [#allocation6], 4294964160 }
  0x59   :  { %1221 = dma.done.wait [#allocation9], 4096  }
  0x5a   :  { %1222 = vsyncadd [#allocation9], 4294963200  ;;  %v1234_v0 = vmov 0.0   ;;  %vm1235_vm0 = vmmov 0   ;;  %vm104_vm1 = vcmask 1043456   ;;  %v92_v2 = vld [vmem:[#allocation2] sm:$0xff] }
  0x5b   :  { %942 = vmatprep.subr.bf16.mxu0 %v1234_v0  ;;  %944 = vmatprep.mubr.msk.bf16.mxu0 %vm1235_vm0, %v1234_v0  ;;  %v94_v1 = vld [vmem:[#allocation5] sm:$0xf]  ;;  %v93_v4 = vpack.c.bf16 %v92_v2, %v92_v2  ;;  %v1021_v5 = vld [vmem:[#allocation7] sm:$0xff]   ;;  %vm100_vm2 = vcmask 64512   ;;  %v1022_v6 = vld [vmem:[#allocation7 + $0x8] sm:$0xff]   ;;  %v1236_v37 = vmov 0  }
  0x5c   :  { %948 = vmatprep.subr.bf16.mxu1 %v1234_v0  ;;  %964 = vmatprep.mubr.msk.bf16.mxu1 %vm1235_vm0, %v1234_v0  ;;  %v106_v3 = vsel %vm104_vm1, %v94_v1, 0  ;;  %v1023_v7 = vld [vmem:[#allocation7 + $0x10] sm:$0xff]   ;;  %v1024_v8 = vld [vmem:[#allocation7 + $0x18] sm:$0xff]   ;;  %v1025_v9 = vld [vmem:[#allocation7 + $0x20] sm:$0xff]   ;;  %s1237_s1 = smov [#allocation11]  }
  0x5d   :  { %943 = vmatpush3.bf16.msra.mxu0 %v106_v3  ;;  %949 = vmatpush3.bf16.msra.mxu1 %v1021_v5  ;;  %v1026_v10 = vld [vmem:[#allocation7 + $0x28] sm:$0xff]   ;;  %v1027_v11 = vld [vmem:[#allocation7 + $0x30] sm:$0xff]   ;;  %v1028_v12 = vld [vmem:[#allocation7 + $0x38] sm:$0xff]   ;;  %v279_v5 = vlaneseq  ;;  %s818_s0 = sshll.u32 %s1237_s1, 4  ;;  %s819_s0 = int_to_ptr.vmem [resolvable:$true] %s818_s0 }
  0x5e   :  { %950 = vmatprep.subr.bf16.mxu1 %v1234_v0  ;;  %v1029_v13 = vld [vmem:[#allocation8] ss:$8 sps:$4 sm:$0xff]   ;;  %v1031_v14 = vld [vmem:[#allocation8 + $0x4] ss:$8 sps:$4 sm:$0xff]   ;;  %v1034_v15 = vld [vmem:[#allocation8 + $0x14] ss:$8 sps:$4 sm:$0xff]   ;;  %p1200_p13 = scmp.lt.s32.totalorder %s819_s0, %s819_s0 }
  0x5f   :  { %369 = vmatprep.subr.bf16.mxu0 %v1031_v14  ;;  %v1032_v16 = vld [vmem:[#allocation8 + $0x10] ss:$8 sps:$4 sm:$0xff]   ;;  %v1037_v17 = vld [vmem:[#allocation8 + $0x24] ss:$8 sps:$4 sm:$0xff]   ;;  %v1035_v18 = vld [vmem:[#allocation8 + $0x20] ss:$8 sps:$4 sm:$0xff]  }
  0x60   :  { %945 = vmatmul.mubr.msk.bf16.vlgmr.msra.gmra.mrb[0].mxu0 %vm100_vm2, %v93_v4  ;;  %v1040_v19 = vld [vmem:[#allocation8 + $0x34] ss:$8 sps:$4 sm:$0xff]   ;;  %v1038_v20 = vld [vmem:[#allocation8 + $0x30] ss:$8 sps:$4 sm:$0xff]   ;;  %v1043_v21 = vld [vmem:[#allocation8 + $0x44] ss:$8 sps:$4 sm:$0xff]  }
  0x61   :  { %951 = vmatpush3.bf16.msra.mxu1 %v1022_v6  ;;  %370 = vmatpush1.bf16.msra.mxu0 %v1029_v13  ;;  %v1041_v22 = vld [vmem:[#allocation8 + $0x40] ss:$8 sps:$4 sm:$0xff]   ;;  %v1046_v23 = vld [vmem:[#allocation8 + $0x54] ss:$8 sps:$4 sm:$0xff]   ;;  %v1044_v24 = vld [vmem:[#allocation8 + $0x50] ss:$8 sps:$4 sm:$0xff]  }
  0x62   :  { %952 = vmatprep.subr.bf16.mxu1 %v1234_v0  ;;  %371 = vmatprep.subr.bf16.mxu0 %v1034_v15  ;;  %v1049_v25 = vld [vmem:[#allocation8 + $0x64] ss:$8 sps:$4 sm:$0xff]   ;;  %v1047_v26 = vld [vmem:[#allocation8 + $0x60] ss:$8 sps:$4 sm:$0xff]   ;;  %v829_v27 = vld [vmem:[%s1420_s5] ss:$0 sm:$0xff] }
  0x63   :  { %v1052_v35 = vld [vmem:[#allocation8 + $0x74] ss:$8 sps:$4 sm:$0xff]   ;;  %v1050_v36 = vld [vmem:[#allocation8 + $0x70] ss:$8 sps:$4 sm:$0xff]   ;;  %401 = vmatprep.mubr.bf16.mxu0 %v1236_v37  ;;  %v1053_v38 = vld [vmem:[#allocation10 + $0x40] sm:$0xff]   ;;  %v280_v6 = vshrl.u32 %v279_v5, 7 }
  0x64   :  { %v1054_v39 = vld [vmem:[#allocation10] sm:$0xff]   ;;  %v1055_v40 = vld [vmem:[#allocation10 + $0x48] sm:$0xff]   ;;  %v1057_v42 = vld [vmem:[#allocation10 + $0x50] sm:$0xff]   ;;  %s1195_s23 = scalar_lea.vmem %s819_s0, 128 }
  0x65   :  { %953 = vmatpush3.bf16.msra.mxu1 %v1023_v7  ;;  %372 = vmatpush1.bf16.msra.mxu0 %v1032_v16  ;;  %v1056_v41 = vld [vmem:[#allocation10 + $0x8] sm:$0xff]   ;;  %v1058_v43 = vld [vmem:[#allocation10 + $0x10] sm:$0xff]   ;;  %v1059_v44 = vld [vmem:[#allocation10 + $0x58] sm:$0xff]   ;;  %v281_v7 = vsub.s32 0, %v280_v6  ;;  %p1196_p12 = scmp.ne.s32.totalorder %s819_s0, %s1195_s23  ;;  %p1201_p0 = scmp.lt.s32.totalorder %s1195_s23, %s1195_s23 }
  0x66   :  { %954 = vmatprep.subr.bf16.mxu1 %v1234_v0  ;;  %373 = vmatprep.subr.bf16.mxu0 %v1037_v17  ;;  %v1060_v45 = vld [vmem:[#allocation10 + $0x18] sm:$0xff]   ;;  %v1061_v46 = vld [vmem:[#allocation10 + $0x60] sm:$0xff]   ;;  %v1063_v48 = vld [vmem:[#allocation10 + $0x68] sm:$0xff]  }
  0x67   :  { %v1062_v47 = vld [vmem:[#allocation10 + $0x20] sm:$0xff]   ;;  %v1064_v49 = vld [vmem:[#allocation10 + $0x28] sm:$0xff]   ;;  %v831_v50 = vld [vmem:[%s1420_s5 + $0x1] ss:$0 sm:$0xff]  ;;  %p1202_p1 = por %p1201_p0, %p1200_p13 }
  0x68   :  { %v1065_v58 = vld [vmem:[#allocation10 + $0x70] sm:$0xff]   ;;  %v1067_v60 = vld [vmem:[#allocation10 + $0x78] sm:$0xff]   ;;  %v1069_v62 = vld [vmem:[#allocation7 + $0x40] sm:$0xff]  }
  0x69   :  { %955 = vmatpush3.bf16.msra.mxu1 %v1024_v8  ;;  %374 = vmatpush1.bf16.msra.mxu0 %v1035_v18  ;;  %v1066_v59 = vld [vmem:[#allocation10 + $0x30] sm:$0xff]   ;;  %v1068_v61 = vld [vmem:[#allocation10 + $0x38] sm:$0xff]   ;;  %v1070_v63 = vld [vmem:[#allocation7 + $0x48] sm:$0xff]   ;;  %p1203_p2 = pnand %p1202_p1, %p1196_p12 }
  0x6a   :  { %956 = vmatprep.subr.bf16.mxu1 %v1234_v0  ;;  %375 = vmatprep.subr.bf16.mxu0 %v1040_v19  ;;  %v1071_v1 = vld [vmem:[#allocation7 + $0x50] sm:$0xff]   ;;  %v1072_v2 = vld [vmem:[#allocation7 + $0x58] sm:$0xff]   ;;  %v1073_v3 = vld [vmem:[#allocation7 + $0x60] sm:$0xff]  }
  0x6b   :  { %v1074_v4 = vld [vmem:[#allocation7 + $0x68] sm:$0xff]   ;;  %v277_v8 = vld [vmem:[%s1421_s6] sm:$0x3] }
  0x6d   :  { %957 = vmatpush3.bf16.msra.mxu1 %v1025_v9  ;;  %376 = vmatpush1.bf16.msra.mxu0 %v1038_v20  ;;  %v285_v9 = vsub.s32 1, %v280_v6 }
  0x6e   :  { %958 = vmatprep.subr.bf16.mxu1 %v1234_v0  ;;  %377 = vmatprep.subr.bf16.mxu0 %v1043_v21 }
  0x71   :  { %959 = vmatpush3.bf16.msra.mxu1 %v1026_v10  ;;  %378 = vmatpush1.bf16.msra.mxu0 %v1041_v22  ;;  %v282_v10 = vrot.slane %v277_v8, %v281_v7  ;;  %v1075_v22 = vld [vmem:[#allocation7 + $0x70] sm:$0xff]  }
  0x72   :  { %960 = vmatprep.subr.bf16.mxu1 %v1234_v0  ;;  %379 = vmatprep.subr.bf16.mxu0 %v1046_v23  ;;  %v1076_v23 = vld [vmem:[#allocation7 + $0x78] sm:$0xff]  }
  0x75   :  { %961 = vmatpush3.bf16.msra.mxu1 %v1027_v11  ;;  %380 = vmatpush1.bf16.msra.mxu0 %v1044_v24  ;;  %v286_v11 = vrot.slane %v277_v8, %v285_v9  ;;  %v1077_v24 = vld [vmem:[#allocation7 + $0x80] sm:$0xff]  }
  0x76   :  { %962 = vmatprep.subr.bf16.mxu1 %v1234_v0  ;;  %381 = vmatprep.subr.bf16.mxu0 %v1049_v25  ;;  %v1078_v25 = vld [vmem:[#allocation7 + $0x88] sm:$0xff]  }
  0x79   :  { %963 = vmatpush3.bf16.msra.mxu1 %v1028_v12  ;;  %382 = vmatpush1.bf16.msra.mxu0 %v1047_v26  ;;  %v1079_v26 = vld [vmem:[#allocation7 + $0x90] sm:$0xff]  }
  0x7a   :  { %383 = vmatprep.subr.bf16.mxu0 %v1052_v35  ;;  %902 = vmatprep.subr.bf16.mxu1 %v1053_v38 }
  0x7d   :  { %384 = vmatpush1.bf16.msra.mxu0 %v1050_v36 }
  0x7e   :  { %968 = vmatprep.subr.bf16.mxu0 %v1234_v0 }
 0x133   :  { %v142_v28 = vpop.f32.mrb[0].mxu0 }
 0x134   :  { %v143_v29 = vadd.f32 %v829_v27, %v142_v28  ;;  %v946_v30 = vpop.f32.mrb[1].mxu0  ;;  %v1080_v27 = vld [vmem:[#allocation7 + $0x98] sm:$0xff]   ;;  %v1081_v28 = vld [vmem:[#allocation7 + $0xa0] sm:$0xff]  }
 0x135   :  { %v145_v31 = vpop.f32.mrb[2].mxu0 }
 0x136   :  { %v148_v32 = vmax.f32 %v143_v29, 0.0  ;;  %v947_v33 = vpop.f32.mrb[3].mxu0  ;;  %v1082_v29 = vld [vmem:[#allocation7 + $0xa8] sm:$0xff]   ;;  %v856_v31 = vld [vmem:[%s1420_s5 + $0x2] ss:$0 sm:$0xff] }
 0x138   :  { %v149_v34 = vpack.c.bf16 %v148_v32, %v148_v32 }
 0x13a   :  { %965 = vmatmul.mubr.bf16.vlgmr.msra.gmra.mrb[0].mxu1 %v149_v34 }
 0x13b   :  { %903 = vmatpush3.bf16.msra.mxu1 %v1054_v39  ;;  %v1083_v39 = vld [vmem:[#allocation7 + $0xb0] sm:$0xff]  }
 0x13c   :  { %904 = vmatprep.subr.bf16.mxu1 %v1055_v40  ;;  %v1084_v40 = vld [vmem:[#allocation7 + $0xb8] sm:$0xff]  }
 0x13f   :  { %905 = vmatpush3.bf16.msra.mxu1 %v1056_v41  ;;  %v873_v41 = vld [vmem:[%s1420_s5 + $0x3] ss:$0 sm:$0xff] }
 0x140   :  { %906 = vmatprep.subr.bf16.mxu1 %v1057_v42 }
 0x143   :  { %907 = vmatpush3.bf16.msra.mxu1 %v1058_v43 }
 0x144   :  { %908 = vmatprep.subr.bf16.mxu1 %v1059_v44 }
 0x147   :  { %909 = vmatpush3.bf16.msra.mxu1 %v1060_v45 }
 0x148   :  { %910 = vmatprep.subr.bf16.mxu1 %v1061_v46 }
 0x14b   :  { %911 = vmatpush3.bf16.msra.mxu1 %v1062_v47 }
 0x14c   :  { %912 = vmatprep.subr.bf16.mxu1 %v1063_v48 }
 0x14f   :  { %913 = vmatpush3.bf16.msra.mxu1 %v1064_v49  ;;  %v882_v49 = vld [vmem:[%s1420_s5 + $0x4] ss:$0 sm:$0xff] }
 0x150   :  { %914 = vmatprep.subr.bf16.mxu1 %v1065_v58 }
 0x153   :  { %915 = vmatpush3.bf16.msra.mxu1 %v1066_v59 }
 0x154   :  { %916 = vmatprep.subr.bf16.mxu1 %v1067_v60 }
 0x157   :  { %917 = vmatpush3.bf16.msra.mxu1 %v1068_v61 }
 0x158   :  { %988 = vmatprep.subr.bf16.mxu1 %v1234_v0 }
 0x20d   :  { %v253_v51 = vpop.f32.mrb[0].mxu1 }
 0x20e   :  { %v254_v52 = vadd.f32 %v831_v50, %v253_v51  ;;  %v966_v53 = vpop.f32.mrb[1].mxu1 }
 0x20f   :  { %v256_v54 = vpop.f32.mrb[2].mxu1 }
 0x210   :  { %v259_v55 = vmax.f32 %v254_v52, 0.0  ;;  %v967_v56 = vpop.f32.mrb[3].mxu1 }
 0x212   :  { %v260_v57 = vpack.c.bf16 %v259_v55, %v259_v55 }
 0x214   :  { %402 = vmatmul.mubr.bf16.vlgmr.msra.gmra.mrb[4].mxu0 %v260_v57 }
 0x215   :  { %984 = vmatprep.mubr.msk.bf16.mxu0 %vm1235_vm0, %v1234_v0  ;;  %969 = vmatpush3.bf16.msra.mxu0 %v1069_v62 }
 0x216   :  { %970 = vmatprep.subr.bf16.mxu0 %v1234_v0 }
 0x219   :  { %971 = vmatpush3.bf16.msra.mxu0 %v1070_v63 }
 0x21a   :  { %972 = vmatprep.subr.bf16.mxu0 %v1234_v0 }
 0x21d   :  { %973 = vmatpush3.bf16.msra.mxu0 %v1071_v1 }
 0x21e   :  { %974 = vmatprep.subr.bf16.mxu0 %v1234_v0 }
 0x221   :  { %975 = vmatpush3.bf16.msra.mxu0 %v1072_v2 }
 0x222   :  { %976 = vmatprep.subr.bf16.mxu0 %v1234_v0 }
 0x225   :  { %977 = vmatpush3.bf16.msra.mxu0 %v1073_v3 }
 0x226   :  { %978 = vmatprep.subr.bf16.mxu0 %v1234_v0 }
 0x229   :  { %979 = vmatpush3.bf16.msra.mxu0 %v1074_v4 }
 0x22a   :  { %980 = vmatprep.subr.bf16.mxu0 %v1234_v0 }
 0x22d   :  { %981 = vmatpush3.bf16.msra.mxu0 %v1075_v22 }
 0x22e   :  { %982 = vmatprep.subr.bf16.mxu0 %v1234_v0 }
 0x231   :  { %983 = vmatpush3.bf16.msra.mxu0 %v1076_v23 }
 0x2e7   :  { %v403_v12 = vpop.f32.mrb[4].mxu0 }
 0x2e8   :  { %v404_v13 = vadd.f32 %v403_v12, %v282_v10  ;;  %v405_v14 = vpop.f32.mrb[5].mxu0 }
 0x2e9   :  { %v406_v15 = vadd.f32 %v405_v14, %v286_v11  ;;  %v407_v16 = vpop.f32.mrb[6].mxu0 }
 0x2ea   :  { %v410_v17 = vmax.f32 %v404_v13, 0.0  ;;  %v408_v18 = vpop.f32.mrb[7].mxu0 }
 0x2eb   :  { %v411_v19 = vmax.f32 %v406_v15, 0.0 }
 0x2ec   :  { %v412_v21 = vpack.c.bf16 %v410_v17, %v410_v17 }
 0x2ed   :  { %v413_v20 = vpack.c.bf16 %v411_v19, %v411_v19 }
 0x2ef   :  { %579 = vmatprep.mubr.bf16.mxu1 %v413_v20 }
 0x2f0   :  { %580 = vmatmul.mubr.bf16.vlgmr.msra.gmra.mrb[4].mxu1 %v412_v21 }
 0x2f1   :  { %1004 = vmatprep.mubr.msk.bf16.mxu1 %vm1235_vm0, %v1234_v0  ;;  %989 = vmatpush3.bf16.msra.mxu1 %v1077_v24 }
 0x2f2   :  { %990 = vmatprep.subr.bf16.mxu1 %v1234_v0 }
 0x2f5   :  { %991 = vmatpush3.bf16.msra.mxu1 %v1078_v25 }
 0x2f6   :  { %992 = vmatprep.subr.bf16.mxu1 %v1234_v0 }
 0x2f9   :  { %993 = vmatpush3.bf16.msra.mxu1 %v1079_v26 }
 0x2fa   :  { %994 = vmatprep.subr.bf16.mxu1 %v1234_v0 }
 0x2fd   :  { %995 = vmatpush3.bf16.msra.mxu1 %v1080_v27 }
 0x2fe   :  { %996 = vmatprep.subr.bf16.mxu1 %v1234_v0 }
 0x301   :  { %997 = vmatpush3.bf16.msra.mxu1 %v1081_v28 }
 0x302   :  { %998 = vmatprep.subr.bf16.mxu1 %v1234_v0 }
 0x305   :  { %999 = vmatpush3.bf16.msra.mxu1 %v1082_v29 }
 0x306   :  { %1000 = vmatprep.subr.bf16.mxu1 %v1234_v0 }
 0x309   :  { %1001 = vmatpush3.bf16.msra.mxu1 %v1083_v39 }
 0x30a   :  { %1002 = vmatprep.subr.bf16.mxu1 %v1234_v0 }
 0x30d   :  { %1003 = vmatpush3.bf16.msra.mxu1 %v1084_v40 }
 0x3c3   :  { %v918_v30 = vpop.f32.mrb[4].mxu1 }
 0x3c4   :  { %v919_v32 = vpop.f32.mrb[5].mxu1 }
 0x3c5   :  { %v920_v33 = vadd.f32 %v919_v32, %v918_v30  ;;  %v921_v34 = vpop.f32.mrb[6].mxu1 }
 0x3c6   :  { %v922_v35 = vpop.f32.mrb[7].mxu1 }
 0x3c7   :  { %v582_v36 = vadd.f32 %v920_v33, %v856_v31 }
 0x3c9   :  { %v587_v37 = vmax.f32 %v582_v36, 0.0 }
 0x3cb   :  { %v588_v38 = vpack.c.bf16 %v587_v37, %v587_v37 }
 0x3cd   :  { %985 = vmatmul.mubr.bf16.vlgmr.msra.gmra.mrb[8].mxu0 %v588_v38 }
 0x4a0   :  { %v693_v42 = vpop.f32.mrb[8].mxu0 }
 0x4a1   :  { %v694_v43 = vadd.f32 %v873_v41, %v693_v42  ;;  %v986_v44 = vpop.f32.mrb[9].mxu0 }
 0x4a2   :  { %v696_v45 = vpop.f32.mrb[10].mxu0 }
 0x4a3   :  { %v699_v46 = vmax.f32 %v694_v43, 0.0  ;;  %v987_v47 = vpop.f32.mrb[11].mxu0 }
 0x4a5   :  { %v700_v48 = vpack.c.bf16 %v699_v46, %v699_v46 }
 0x4a7   :  { %1005 = vmatmul.mubr.bf16.vlgmr.msra.gmra.mrb[8].mxu1 %v700_v48 }
 0x57a   :  { %v805_v0 = vpop.f32.mrb[8].mxu1 }
 0x57b   :  { %v806_v50 = vadd.f32 %v882_v49, %v805_v0  ;;  %v1006_v51 = vpop.f32.mrb[9].mxu1 }
 0x57c   :  { %v808_v52 = vpop.f32.mrb[10].mxu1 }
 0x57d   :  { %811 = vst [vmem:[#allocation11] sm:$0xff] %v806_v50  ;;  %v1007_v53 = vpop.f32.mrb[11].mxu1 }
 0x57e   :  { %1206 = shalt.err (!%p1203_p2)
}
 0x57f   :  { %s1207_s5 = scalar_lea.hbm %s1422_s7, 128 }
 0x580   :  { %p1208_p3 = scmp.ne.s32.totalorder %s1422_s7, %s1207_s5  ;;  %p1211_p4 = scmp.lt.u32.totalorder %s1207_s5, %s1422_s7 }
 0x582   :  { %p1213_p5 = pnand %p1211_p4, %p1208_p3 }
 0x584   :  { %1216 = shalt.err (!%p1213_p5)
}
 0x585   :  { %821 = dma.vmem_to_hbm [thread:$0]  %s819_s0, 128, %s1422_s7, [#allocation4]  }
 0x586   :  { %1223 = dma.done.wait [#allocation4], 128  }
 0x587   :  { %1224 = vsyncadd [#allocation4], 4294967168 }
 0x588   :  { %825 = vsyncpa [#allocation3], 1 }
 0x589   :  { %826 = vsyncpa [#allocation6], 1 }
 0x58a   :  { %827 = vsyncpa [#allocation9], 1 }
 0x58b   :  { %828 = vsyncpa [#allocation4], 1 }

</bundles_post_ra>
